<compile_context>
chip_gen: v7x
topology: tpu7x:2x2x1
jax: 0.10.0
libtpu: 0.0.40
codegen_flags: <defaults>
</compile_context>

<pallas_src>
import numpy as np
import jax
import jax.numpy as jnp
from jax import lax
from jax.experimental import pallas as pl
from jax.experimental.pallas import tpu as pltpu

# ---- model hyper-parameters (from the module: M = memory depth, neurons) ----
M = 6                          # -> input width M+1 = 7, conv output width M-1 = 5
NEURONS = 32
H_IN, W_IN = 5, M + 1          # conv1 input spatial dims (implied by 3*3*(M-1))
HO, WO = H_IN - 2, W_IN - 2    # 3, M-1
C_OUT = 3
IN_FLAT = H_IN * W_IN          # 35
FLAT = C_OUT * HO * WO         # 3*3*(M-1) = 45
OUT = 2                        # true logit width (no lane padding)
TB_MAX = 8192                  # batch tile upper bound (multiple of 16)

# Static im2col scatter pattern: Wconv[(i+ki)*W_IN + (j+kj), c*HO*WO + i*WO + j]
# = wc[c, ki, kj], reproducing PyTorch's c-major flatten order exactly.
_rows, _cols, _widx = [], [], []
for _c in range(C_OUT):
    for _i in range(HO):
        for _j in range(WO):
            _col = _c * HO * WO + _i * WO + _j
            for _ki in range(3):
                for _kj in range(3):
                    _rows.append((_i + _ki) * W_IN + (_j + _kj))
                    _cols.append(_col)
                    _widx.append(_c * 9 + _ki * 3 + _kj)
_ROWS = np.asarray(_rows, np.int32)
_COLS = np.asarray(_cols, np.int32)
_WIDX = np.asarray(_widx, np.int32)


def _round_up(x, m):
    return ((x + m - 1) // m) * m


def rvtdcnn_kernel(x_ref, wc_ref, bc_ref, w1_ref, b1_ref, w2_ref, b2_ref, o_ref):
    # x_ref : (TB, 35)          bf16 VMEM  flattened input rows
    # wc_ref: (35, 45)          bf16 VMEM  im2col conv1 weight (flatten-order cols)
    # bc_ref: (1, 45)           f32  VMEM  conv1 bias broadcast per flatten column
    # w1_ref: (45, NEURONS)     bf16 VMEM  fc1 weight (transposed)
    # b1_ref: (1, NEURONS)      f32  VMEM
    # w2_ref: (NEURONS, 2)      bf16 VMEM  fc2 weight (transposed)
    # b2_ref: (1, 2)            f32  VMEM
    # o_ref : (TB, 2)           f32  VMEM  logits (slim, no lane padding)
    x = x_ref[...]
    conv = jnp.tanh(
        jnp.dot(x, wc_ref[...], preferred_element_type=jnp.float32) + bc_ref[...])
    h = jnp.tanh(
        jnp.dot(conv.astype(jnp.bfloat16), w1_ref[...],
                preferred_element_type=jnp.float32) + b1_ref[...])
    o_ref[...] = (
        jnp.dot(h.astype(jnp.bfloat16), w2_ref[...],
                preferred_element_type=jnp.float32) + b2_ref[...])


def prepare_params(params):
    """Hoisted weight prep (im2col scatter, transposes, bf16 casts).

    Call once per set of parameters and reuse across forward calls.
    """
    wc, bc, w1, b1, w2, b2 = params
    wconv = (jnp.zeros((IN_FLAT, FLAT), jnp.float32)
             .at[_ROWS, _COLS].set(wc.reshape(-1)[_WIDX])).astype(jnp.bfloat16)
    bconv = jnp.repeat(bc, HO * WO).reshape(1, FLAT).astype(jnp.float32)
    w1t = w1.T.astype(jnp.bfloat16)                       # (45, NEURONS)
    b1r = b1.reshape(1, NEURONS).astype(jnp.float32)
    w2t = w2.T.astype(jnp.bfloat16)                       # (NEURONS, 2)
    b2r = b2.reshape(1, OUT).astype(jnp.float32)
    return (wconv, bconv, w1t, b1r, w2t, b2r)


def rvtdcnn_forward(x_nchw, prepared, tb_max=TB_MAX):
    """x_nchw: (N, 1, H_IN, W_IN) float32 (PyTorch NCHW). Returns (N, 2) f32."""
    wconv, bconv, w1t, b1r, w2t, b2r = prepared
    N = x_nchw.shape[0]
    # Squeeze channel + flatten spatial dims -> (N, 35) bf16 transport.
    x_flat = x_nchw.reshape(N, IN_FLAT).astype(jnp.bfloat16)

    # Batch tile: multiple of 16 (bf16 sublane packing), capped at ceil(N/2)
    # so the grid keeps >= 2 steps for megacore sharding on v7x.
    tb = int(max(16, min(tb_max, _round_up(pl.cdiv(N, 2), 16))))
    grid = (pl.cdiv(N, tb),)                               # ragged tail ok

    weight_bytes = (wconv.size + w1t.size + w2t.size) * 2 + \
                   (bconv.size + b1r.size + b2r.size) * 4
    cost = pl.CostEstimate(
        flops=2 * N * (IN_FLAT * FLAT + FLAT * NEURONS + NEURONS * OUT),
        transcendentals=N * (FLAT + NEURONS),
        bytes_accessed=N * (IN_FLAT * 2 + OUT * 4) + weight_bytes)

    out = pl.pallas_call(
        rvtdcnn_kernel,
        grid=grid,
        in_specs=[
            pl.BlockSpec((tb, IN_FLAT), lambda i: (i, 0)),
            pl.BlockSpec((IN_FLAT, FLAT), lambda i: (0, 0)),
            pl.BlockSpec((1, FLAT), lambda i: (0, 0)),
            pl.BlockSpec((FLAT, NEURONS), lambda i: (0, 0)),
            pl.BlockSpec((1, NEURONS), lambda i: (0, 0)),
            pl.BlockSpec((NEURONS, OUT), lambda i: (0, 0)),
            pl.BlockSpec((1, OUT), lambda i: (0, 0)),
        ],
        out_specs=pl.BlockSpec((tb, OUT), lambda i: (i, 0)),
        out_shape=jax.ShapeDtypeStruct((N, OUT), jnp.float32),
        compiler_params=pltpu.CompilerParams(
            dimension_semantics=("parallel",),
            vmem_limit_bytes=32 * 1024 * 1024),
        cost_estimate=cost,
    )(x_flat, wconv, bconv, w1t, b1r, w2t, b2r)
    return out


def rvtdcnn_reference(x_nchw, params):
    """Pure-JAX f32 reference matching the PyTorch forward exactly."""
    wc, bc, w1, b1, w2, b2 = params
    conv = lax.conv_general_dilated(
        x_nchw, wc.reshape(C_OUT, 1, 3, 3), window_strides=(1, 1),
        padding="VALID", dimension_numbers=("NCHW", "OIHW", "NCHW"))
    conv = jnp.tanh(conv + bc.reshape(1, C_OUT, 1, 1))
    flat = conv.reshape(conv.shape[0], -1)                 # (N, 3*3*(M-1))
    h = jnp.tanh(flat @ w1.T + b1)
    return h @ w2.T + b2


def init_params(key):
    k = jax.random.split(key, 6)
    wc = 0.3 * jax.random.normal(k[0], (C_OUT, 3, 3), jnp.float32)   # conv1 weight
    bc = 0.1 * jax.random.normal(k[1], (C_OUT,), jnp.float32)        # conv1 bias
    w1 = 0.2 * jax.random.normal(k[2], (NEURONS, FLAT), jnp.float32) # fc1 (out, in)
    b1 = 0.1 * jax.random.normal(k[3], (NEURONS,), jnp.float32)
    w2 = 0.2 * jax.random.normal(k[4], (2, NEURONS), jnp.float32)    # fc2 (out, in)
    b2 = 0.1 * jax.random.normal(k[5], (2,), jnp.float32)
    return (wc, bc, w1, b1, w2, b2)


if __name__ == "__main__":
    key = jax.random.PRNGKey(0)
    k_x, k_x2, k_p = jax.random.split(key, 3)
    params = init_params(k_p)
    prepared = prepare_params(params)        # hoisted weight prep, reused below

    # bf16 transport of activations/weights -> compare against the f32
    # reference with a bf16-appropriate tolerance.
    TOL = dict(atol=2e-2, rtol=2e-2)

    # Primary check: small batch, single tile.
    batch = 2
    x = jax.random.normal(k_x, (batch, 1, H_IN, W_IN), jnp.float32)  # NCHW
    out = jax.block_until_ready(rvtdcnn_forward(x, prepared))
    ref = rvtdcnn_reference(x, params)
    assert out.shape == (batch, 2)
    assert jnp.allclose(out, ref, **TOL), (out, ref)

    # Ragged multi-tile check (grid > 1, partial last tile, no input padding).
    batch2 = 19
    x2 = jax.random.normal(k_x2, (batch2, 1, H_IN, W_IN), jnp.float32)
    out2 = jax.block_until_ready(rvtdcnn_forward(x2, prepared, tb_max=16))
    ref2 = rvtdcnn_reference(x2, params)
    assert out2.shape == (batch2, 2)
    assert jnp.allclose(out2, ref2, **TOL), (out2, ref2)

    print("KERNEL_OK")
</pallas_src>

<mosaic_0001>
module attributes {stable_mosaic.version = 11 : i64} {
  func.func @rvtdcnn_kernel(%arg0: i32, %arg1: memref<16x35xbf16, #tpu.memory_space<vmem>>, %arg2: memref<35x45xbf16, #tpu.memory_space<vmem>>, %arg3: memref<1x45xf32, #tpu.memory_space<vmem>>, %arg4: memref<45x32xbf16, #tpu.memory_space<vmem>>, %arg5: memref<1x32xf32, #tpu.memory_space<vmem>>, %arg6: memref<32x2xbf16, #tpu.memory_space<vmem>>, %arg7: memref<1x2xf32, #tpu.memory_space<vmem>>, %arg8: memref<16x2xf32, #tpu.memory_space<vmem>>) attributes {dimension_semantics = [#tpu.dimension_semantics<parallel>], iteration_bounds = array<i64: 1>, scalar_prefetch = 0 : i64, scratch_operands = 0 : i64, tpu.core_type = #tpu.core_type<tc>, window_params = [{transform_indices = @transform_0, window_bounds = array<i64: 16, 35>}, {pipeline_mode = #tpu.pipeline_mode<synchronous>, transform_indices = @transform_1, window_bounds = array<i64: 35, 45>}, {pipeline_mode = #tpu.pipeline_mode<synchronous>, transform_indices = @transform_2, window_bounds = array<i64: 1, 45>}, {pipeline_mode = #tpu.pipeline_mode<synchronous>, transform_indices = @transform_3, window_bounds = array<i64: 45, 32>}, {pipeline_mode = #tpu.pipeline_mode<synchronous>, transform_indices = @transform_4, window_bounds = array<i64: 1, 32>}, {pipeline_mode = #tpu.pipeline_mode<synchronous>, transform_indices = @transform_5, window_bounds = array<i64: 32, 2>}, {pipeline_mode = #tpu.pipeline_mode<synchronous>, transform_indices = @transform_6, window_bounds = array<i64: 1, 2>}, {transform_indices = @transform_7, window_bounds = array<i64: 16, 2>}]} {
    %c0 = arith.constant 0 : index
    %c0_0 = arith.constant 0 : index
    %0 = vector.load %arg1[%c0, %c0_0] : memref<16x35xbf16, #tpu.memory_space<vmem>>, vector<16x35xbf16>
    %c0_1 = arith.constant 0 : index
    %c0_2 = arith.constant 0 : index
    %1 = vector.load %arg2[%c0_1, %c0_2] : memref<35x45xbf16, #tpu.memory_space<vmem>>, vector<35x45xbf16>
    %cst = arith.constant dense<0.000000e+00> : vector<16x45xf32>
    %2 = tpu.matmul %0, %1, %cst {dimension_numbers = #tpu.dot_dimension_numbers<[1], [0], [0], [1], [0, 0, 1, 1], [], []>} : vector<16x35xbf16>, vector<35x45xbf16>, vector<16x45xf32> -> vector<16x45xf32>
    %c0_3 = arith.constant 0 : index
    %c0_4 = arith.constant 0 : index
    %3 = vector.load %arg3[%c0_3, %c0_4] : memref<1x45xf32, #tpu.memory_space<vmem>>, vector<1x45xf32>
    %4 = vector.broadcast %3 : vector<1x45xf32> to vector<16x45xf32>
    %5 = arith.addf %2, %4 : vector<16x45xf32>
    %6 = math.tanh %5 : vector<16x45xf32>
    %7 = arith.truncf %6 : vector<16x45xf32> to vector<16x45xbf16>
    %c0_5 = arith.constant 0 : index
    %c0_6 = arith.constant 0 : index
    %8 = vector.load %arg4[%c0_5, %c0_6] : memref<45x32xbf16, #tpu.memory_space<vmem>>, vector<45x32xbf16>
    %cst_7 = arith.constant dense<0.000000e+00> : vector<16x32xf32>
    %9 = tpu.matmul %7, %8, %cst_7 {dimension_numbers = #tpu.dot_dimension_numbers<[1], [0], [0], [1], [0, 0, 1, 1], [], []>} : vector<16x45xbf16>, vector<45x32xbf16>, vector<16x32xf32> -> vector<16x32xf32>
    %c0_8 = arith.constant 0 : index
    %c0_9 = arith.constant 0 : index
    %10 = vector.load %arg5[%c0_8, %c0_9] : memref<1x32xf32, #tpu.memory_space<vmem>>, vector<1x32xf32>
    %11 = vector.broadcast %10 : vector<1x32xf32> to vector<16x32xf32>
    %12 = arith.addf %9, %11 : vector<16x32xf32>
    %13 = math.tanh %12 : vector<16x32xf32>
    %14 = arith.truncf %13 : vector<16x32xf32> to vector<16x32xbf16>
    %c0_10 = arith.constant 0 : index
    %c0_11 = arith.constant 0 : index
    %15 = vector.load %arg6[%c0_10, %c0_11] : memref<32x2xbf16, #tpu.memory_space<vmem>>, vector<32x2xbf16>
    %cst_12 = arith.constant dense<0.000000e+00> : vector<16x2xf32>
    %16 = tpu.matmul %14, %15, %cst_12 {dimension_numbers = #tpu.dot_dimension_numbers<[1], [0], [0], [1], [0, 0, 1, 1], [], []>} : vector<16x32xbf16>, vector<32x2xbf16>, vector<16x2xf32> -> vector<16x2xf32>
    %c0_13 = arith.constant 0 : index
    %c0_14 = arith.constant 0 : index
    %17 = vector.load %arg7[%c0_13, %c0_14] : memref<1x2xf32, #tpu.memory_space<vmem>>, vector<1x2xf32>
    %18 = vector.broadcast %17 : vector<1x2xf32> to vector<16x2xf32>
    %19 = arith.addf %16, %18 : vector<16x2xf32>
    %c0_15 = arith.constant 0 : index
    %c0_16 = arith.constant 0 : index
    %20 = vector.load %arg8[%c0_15, %c0_16] : memref<16x2xf32, #tpu.memory_space<vmem>>, vector<16x2xf32>
    tpu.vector_store %arg8[%c0_15, %c0_16], %19 {strides = array<i32>} : memref<16x2xf32, #tpu.memory_space<vmem>>, vector<16x2xf32>,
    return
  }
  func.func @transform_0(%arg0: i32) -> (i32, i32) {
    %c0_i32 = arith.constant 0 : i32
    %c0_i32_0 = arith.constant 0 : i32
    return %arg0, %c0_i32 : i32, i32
  }
  func.func @transform_1(%arg0: i32) -> (i32, i32) {
    %c0_i32 = arith.constant 0 : i32
    %c0_i32_0 = arith.constant 0 : i32
    %c0_i32_1 = arith.constant 0 : i32
    return %c0_i32, %c0_i32_0 : i32, i32
  }
  func.func @transform_2(%arg0: i32) -> (i32, i32) {
    %c0_i32 = arith.constant 0 : i32
    %c0_i32_0 = arith.constant 0 : i32
    %c0_i32_1 = arith.constant 0 : i32
    return %c0_i32, %c0_i32_0 : i32, i32
  }
  func.func @transform_3(%arg0: i32) -> (i32, i32) {
    %c0_i32 = arith.constant 0 : i32
    %c0_i32_0 = arith.constant 0 : i32
    %c0_i32_1 = arith.constant 0 : i32
    return %c0_i32, %c0_i32_0 : i32, i32
  }
  func.func @transform_4(%arg0: i32) -> (i32, i32) {
    %c0_i32 = arith.constant 0 : i32
    %c0_i32_0 = arith.constant 0 : i32
    %c0_i32_1 = arith.constant 0 : i32
    return %c0_i32, %c0_i32_0 : i32, i32
  }
  func.func @transform_5(%arg0: i32) -> (i32, i32) {
    %c0_i32 = arith.constant 0 : i32
    %c0_i32_0 = arith.constant 0 : i32
    %c0_i32_1 = arith.constant 0 : i32
    return %c0_i32, %c0_i32_0 : i32, i32
  }
  func.func @transform_6(%arg0: i32) -> (i32, i32) {
    %c0_i32 = arith.constant 0 : i32
    %c0_i32_0 = arith.constant 0 : i32
    %c0_i32_1 = arith.constant 0 : i32
    return %c0_i32, %c0_i32_0 : i32, i32
  }
  func.func @transform_7(%arg0: i32) -> (i32, i32) {
    %c0_i32 = arith.constant 0 : i32
    %c0_i32_0 = arith.constant 0 : i32
    return %arg0, %c0_i32 : i32, i32
  }
}

</mosaic_0001>

<bundles_post_ra>
// kernel: tpu_custom_call.1
= control target key start
LH: loop header
LB: loop body
LE: loop exit
PB: predicated region body
PF: predicated region fallthrough
CT: control target
= control target key end

     0   :  { %12 = vsyncpa [#allocation3], 0  ;;  %v447_v1 = vmov 0.0   ;;  %v63_v2 = vlaneseq  ;;  %vm124_vm0 = vcmask 1040384   ;;  %vm125_vm1 = vcmask 1041408   ;;  %s577_s0 = inlined_call_operand.vmem [shape: bf16[2,35], index: 0, kind: input, shape index: {}]   ;;  %s578_s1 = inlined_call_operand.vmem [shape: bf16[35,45], index: 1, kind: input, shape index: {}]   ;;  %s579_s2 = inlined_call_operand.vmem [shape: f32[1,45], index: 2, kind: input, shape index: {}]   ;;  %s580_s3 = inlined_call_operand.vmem [shape: bf16[45,32], index: 3, kind: input, shape index: {}]   ;;  %s581_s4 = inlined_call_operand.vmem [shape: f32[1,32], index: 4, kind: input, shape index: {}]   ;;  %s582_s5 = inlined_call_operand.vmem [shape: bf16[32,2], index: 5, kind: input, shape index: {}]   ;;  %s583_s6 = inlined_call_operand.vmem [shape: f32[1,2], index: 6, kind: input, shape index: {}]   ;;  %s584_s7 = inlined_call_operand.hbm [shape: f32[2,2], index: 7, kind: output, shape index: {}]  }
   0x1   :  { %v407_v0 = vld [vmem:[%s578_s1] sm:$0xff]   ;;  %372 = vmatprep.subr.bf16.mxu0 %v447_v1  ;;  %382 = vmatprep.subr.bf16.mxu1 %v447_v1  ;;  %v408_v3 = vld [vmem:[%s578_s1 + $0x8] sm:$0xff]   ;;  %v409_v4 = vld [vmem:[%s578_s1 + $0x10] ss:$0 sps:$4 sm:$0x33]   ;;  %v448_v5 = vmov 65535  }
   0x2   :  { %373 = vmatpush3.bf16.msra.mxu0 %v407_v0  ;;  %v126_v6 = vsel %vm124_vm0, 4294967295, %v448_v5  ;;  %vm449_vm2 = vmmov 0   ;;  %v28_v7 = vld [vmem:[%s577_s0] sm:$0x1]  ;;  %v29_v8 = vld [vmem:[%s577_s0 + $0x1] sm:$0x1] }
   0x3   :  { %374 = vmatprep.subr.bf16.mxu0 %v447_v1  ;;  %378 = vmatprep.mubr.msk.bf16.mxu0 %vm449_vm2, %v447_v1  ;;  %v127_v9 = vsel %vm125_vm1, %v126_v6, 0  ;;  %v30_v10 = vld [vmem:[%s577_s0 + $0x2] sm:$0x1]  ;;  %v31_v11 = vld [vmem:[%s577_s0 + $0x3] sm:$0x1]  ;;  %v64_v12 = vshrl.u32 %v63_v2, 7  ;;  %v56_v20 = vcombine.low %v28_v7, %v29_v8 }
   0x4   :  { %388 = vmatprep.mubr.msk.bf16.mxu1 %vm449_vm2, %v447_v1  ;;  %v129_v13 = vand.u32 %v409_v4, %v127_v9  ;;  %v32_v14 = vld [vmem:[%s577_s0 + $0x4] sm:$0x1]  ;;  %v33_v15 = vld [vmem:[%s577_s0 + $0x5] sm:$0x1]  ;;  %v34_v16 = vld [vmem:[%s577_s0 + $0x6] sm:$0x1]  ;;  %v57_v21 = vcombine.low %v30_v10, %v31_v11 }
   0x5   :  { %v35_v17 = vld [vmem:[%s577_s0 + $0x7] sm:$0x1]  ;;  %v450_v18 = vmov 1966171168   ;;  %v58_v22 = vcombine.low %v32_v14, %v33_v15  ;;  %vm120_vm3 = vcmask 285696   ;;  %vm209_vm4 = vcmask 1045504  }
   0x6   :  { %375 = vmatpush3.bf16.msra.mxu0 %v408_v3  ;;  %v61_v19 = vunpack.c.l.s4 %v450_v18  ;;  %v59_v23 = vcombine.low %v34_v16, %v35_v17  ;;  %v410_v35 = vld [vmem:[%s580_s3] sm:$0xff]   ;;  %vm210_vm5 = vcmask 1046528   ;;  %v211_v36 = vsel %vm209_vm4, 4294967295, %v448_v5  ;;  %v411_v37 = vld [vmem:[%s580_s3 + $0x8] sm:$0xff]   ;;  %v412_v38 = vld [vmem:[%s580_s3 + $0x10] sm:$0x7f]  }
   0x7   :  { %376 = vmatprep.subr.bf16.mxu0 %v447_v1  ;;  %383 = vmatpush3.bf16.msra.mxu1 %v410_v35  ;;  %v212_v39 = vsel %vm210_vm5, %v211_v36, 0  ;;  %v347_v41 = vld [vmem:[%s579_s2] ss:$0 sm:$0xff]  ;;  %vm205_vm6 = vcmask 367616   ;;  %v414_v52 = vld [vmem:[%s582_s5 + $0x8] sm:$0xff]   ;;  %vm283_vm7 = vcmask 261120  }
   0x8   :  { %v62_v24 = vunpack.c.0.s8 %v61_v19  ;;  %384 = vmatprep.subr.bf16.mxu1 %v447_v1  ;;  %v214_v40 = vand.u32 %v412_v38, %v212_v39  ;;  %v413_v51 = vld [vmem:[%s582_s5] sm:$0xff]   ;;  %vm328_vm8 = vcmask 15360  }
   0x9   :  { %v352_v53 = vld [vmem:[%s581_s4] ss:$0 sm:$0xff] }
   0xa   :  { %377 = vmatpush3.bf16.msra.mxu0 %v129_v13  ;;  %v65_v25 = vsub.s32 %v62_v24, %v64_v12  ;;  %v357_v63 = vld [vmem:[%s583_s6] ss:$0 sm:$0xff] }
   0xb   :  { %392 = vmatprep.subr.bf16.mxu0 %v447_v1  ;;  %385 = vmatpush3.bf16.msra.mxu1 %v411_v37 }
   0xc   :  { %v66_v26 = vrot.slane %v56_v20, %v65_v25  ;;  %v73_v27 = vrot.slane %v57_v21, %v65_v25  ;;  %v80_v28 = vrot.slane %v58_v22, %v65_v25  ;;  %v87_v29 = vrot.slane %v59_v23, %v65_v25  ;;  %386 = vmatprep.subr.bf16.mxu1 %v447_v1 }
   0xe   :  { %v88_v30 = vcombine.low %v66_v26, %v73_v27  ;;  %v89_v31 = vcombine.low %v80_v28, %v87_v29 }
   0xf   :  { %387 = vmatpush3.bf16.msra.mxu1 %v214_v40 }
  0x10   :  { %v96_v32 = vrot.slane %v88_v30, %v65_v25  ;;  %v103_v33 = vrot.slane %v89_v31, %v65_v25 }
  0x12   :  { %v104_v34 = vcombine.low %v96_v32, %v103_v33 }
  0x14   :  { %379 = vmatmul.mubr.msk.bf16.vlgmr.msra.gmra.mrb[0].mxu0 %vm120_vm3, %v104_v34 }
  0x15   :  { %396 = vmatprep.mubr.msk.bf16.mxu0 %vm449_vm2, %v447_v1  ;;  %393 = vmatpush3.bf16.msra.mxu0 %v413_v51 }
  0x16   :  { %394 = vmatprep.subr.bf16.mxu0 %v447_v1 }
  0x19   :  { %395 = vmatpush3.bf16.msra.mxu0 %v414_v52 }
  0xe7   :  { %v165_v42 = vpop.f32.mrb[0].mxu0 }
  0xe8   :  { %v166_v43 = vadd.f32 %v347_v41, %v165_v42  ;;  %v380_v44 = vpop.f32.mrb[1].mxu0 }
  0xe9   :  { %v168_v45 = vpop.f32.mrb[2].mxu0 }
  0xea   :  { %v169_v46 = vadd.f32 %v347_v41, %v168_v45  ;;  %v381_v47 = vpop.f32.mrb[3].mxu0  ;;  %415 = vtanh.f32 %v166_v43 }
  0xec   :  { %417 = vtanh.f32 %v169_v46 }
  0xf4   :  { %v416_v48 = vpop.eup %415 }
  0xf6   :  { %v418_v49 = vpop.eup %417 }
  0xf7   :  { %v174_v50 = vpack.c.bf16 %v418_v49, %v416_v48 }
  0xf9   :  { %389 = vmatmul.mubr.msk.bf16.vlgmr.msra.gmra.mrb[0].mxu1 %vm205_vm6, %v174_v50 }
 0x1cc   :  { %v250_v54 = vpop.f32.mrb[0].mxu1 }
 0x1cd   :  { %v251_v55 = vadd.f32 %v352_v53, %v250_v54  ;;  %v390_v56 = vpop.f32.mrb[1].mxu1 }
 0x1ce   :  { %v253_v57 = vpop.f32.mrb[2].mxu1 }
 0x1cf   :  { %v254_v58 = vadd.f32 %v352_v53, %v253_v57  ;;  %v391_v59 = vpop.f32.mrb[3].mxu1  ;;  %419 = vtanh.f32 %v251_v55 }
 0x1d1   :  { %421 = vtanh.f32 %v254_v58 }
 0x1d9   :  { %v420_v60 = vpop.eup %419 }
 0x1db   :  { %v422_v61 = vpop.eup %421 }
 0x1dc   :  { %v259_v62 = vpack.c.bf16 %v422_v61, %v420_v60 }
 0x1de   :  { %397 = vmatmul.mubr.msk.bf16.vlgmr.msra.gmra.mrb[4].mxu0 %vm283_vm7, %v259_v62 }
 0x2b1   :  { %v321_v0 = vpop.f32.mrb[4].mxu0 }
 0x2b2   :  { %v322_v1 = vadd.f32 %v357_v63, %v321_v0  ;;  %v398_v2 = vpop.f32.mrb[5].mxu0 }
 0x2b3   :  { %v324_v3 = vpop.f32.mrb[6].mxu0 }
 0x2b4   :  { %329 = vst.msk [vmem:[#allocation2] sm:$0xff] %vm328_vm8, %v322_v1  ;;  %v325_v4 = vadd.f32 %v357_v63, %v324_v3  ;;  %v399_v5 = vpop.f32.mrb[7].mxu0 }
 0x2b6   :  { %330 = vst.msk [vmem:[#allocation2 + $0x8] sm:$0xff] %vm328_vm8, %v325_v4 }
 0x2b7   :  { %335 = vsyncadd [#allocation3], 224  ;;  %s451_s4 = smov [#allocation2]  }
 0x2b8   :  { %s336_s1 = sshll.u32 %s451_s4, 4  ;;  %s337_s1 = int_to_ptr.vmem [resolvable:$true] %s336_s1 }
 0x2b9   :  { %s423_s11 = scalar_lea.vmem %s337_s1, 32  ;;  %s427_s12 = scalar_lea.vmem %s337_s1, 256 }
 0x2ba   :  { %p424_p0 = scmp.ne.s32.totalorder %s337_s1, %s423_s11  ;;  %p428_p1 = scmp.lt.s32.totalorder %s337_s1, %s337_s1 }
 0x2bb   :  { %p429_p2 = scmp.lt.s32.totalorder %s427_s12, %s423_s11 }
 0x2bd   :  { %p430_p3 = por %p429_p2, %p428_p1 }
 0x2bf   :  { %p431_p4 = pnand %p430_p3, %p424_p0 }
 0x2c1   :  { %434 = shalt.err (!%p431_p4)
}
 0x2c2   :  { %s435_s14 = scalar_lea.hbm %s584_s7, 32 }
 0x2c3   :  { %p436_p5 = scmp.ne.s32.totalorder %s584_s7, %s435_s14  ;;  %p439_p6 = scmp.lt.u32.totalorder %s435_s14, %s584_s7 }
 0x2c5   :  { %p441_p7 = pnand %p439_p6, %p436_p5 }
 0x2c7   :  { %444 = shalt.err (!%p441_p7)
}
 0x2c8   :  { %s452_s19 = smov 32   ;;  %s453_s20 = smov 2  }
 0x2c9   :  { %342 = dma.vmem_to_hbm [thread:$0]  %s337_s1, 32, %s584_s7, [#allocation3], %s452_s19, %s452_s19, %s453_s20  }
 0x2ca   :  { %445 = dma.done.wait [#allocation3], 256  }
 0x2cb   :  { %446 = vsyncadd [#allocation3], 4294967040 }
 0x2cc   :  { %346 = vsyncpa [#allocation3], 1 }

</bundles_post_ra>
